<compile_context>
chip_gen: v5e
topology: v5e:2x2
jax: 0.10.0
libtpu: 0.0.40
codegen_flags: <defaults>
</compile_context>

<pallas_src>
import functools

import jax
import jax.numpy as jnp
from jax.experimental import pallas as pl
from jax.experimental.pallas import tpu as pltpu


def _round_up(n: int, m: int) -> int:
    return ((n + m - 1) // m) * m


def _cdiv(a: int, b: int) -> int:
    return (a + b - 1) // b


def _vmem_capacity_bytes() -> int:
    try:
        return int(getattr(pltpu.get_tpu_info(), "vmem_capacity_bytes"))
    except Exception:
        return 64 << 20  # conservative default, legal on all generations


_VMEM_CAP = _vmem_capacity_bytes()
_SMALL_VMEM = _VMEM_CAP <= (80 << 20)                 # v7x-like: 64 MiB / TensorCore
_VMEM_BUDGET = (min(_VMEM_CAP, 64 << 20) - (8 << 20)) if _SMALL_VMEM \
    else (_VMEM_CAP - (24 << 20))                      # ~56 MiB (v7x) / ~104 MiB (v5e/v6e)
_TM_TARGET = 512 if _SMALL_VMEM else 1024              # roofline-driven row tile target
_TH_TARGET = 512


def _vmem_estimate(tm: int, th: int, dim: int, x_bytes: int, w_bytes: int) -> int:
    return (2 * 2 * tm * dim * x_bytes          # x + out tiles, double-buffered
            + 2 * dim * (2 * th) * w_bytes      # fused [w1|w3] tile, double-buffered
            + 2 * th * dim * w_bytes            # w2 tile, double-buffered
            + tm * dim * 4                      # f32 accumulator scratch
            + 4 * tm * th * 4)                  # h13 / h1 / h3 / gated f32 temps


def _select_th(hidden: int, dim: int, x_bytes: int, w_bytes: int) -> int:
    th = max(128, min(_TH_TARGET, _round_up(hidden, 128)))
    th = _round_up(th, 128)
    # Shrink th if, together with a modest row tile, it can't fit the VMEM budget.
    while th > 128 and _vmem_estimate(min(_TM_TARGET, 256), th, dim,
                                      x_bytes, w_bytes) > _VMEM_BUDGET:
        th -= 128
    return th


def _select_tm(M: int, dim: int, th: int, x_bytes: int, w_bytes: int) -> int:
    tm = max(8, _round_up(min(_TM_TARGET, _round_up(M, 8)), 8))
    if _SMALL_VMEM and M >= 16:
        # v7x: keep >= 2 row tiles so the "parallel" axis shards across both TCs.
        tm = min(tm, _round_up(_cdiv(M, 2), 8))
    # dim-aware fit: accumulator and x/out tiles scale with dim.
    while tm > 8 and _vmem_estimate(tm, th, dim, x_bytes, w_bytes) > _VMEM_BUDGET:
        tm = max(8, _round_up(tm // 2, 8))
    return tm


def prepare_swiglu_weights(w1, w2, w3, *, compute_dtype=jnp.bfloat16, th=None):
    """One-time weight preparation (outside the per-call hot path).

    w1, w3: (hidden, dim); w2: (dim, hidden)  -- PyTorch nn.Linear layout.
    Returns (w13t, w2t, th):
      w13t: (dim, 2*hidden_pad), hidden tile h holds [w1 tile h | w3 tile h]
      w2t : (hidden_pad, dim)
    Zero-padding of hidden is exact for SwiGLU: silu(0) * 0 == 0.
    """
    hidden, dim = w1.shape
    w_bytes = jnp.dtype(compute_dtype).itemsize
    if th is None:
        th = _select_th(hidden, dim, w_bytes, w_bytes)
    h_pad = _round_up(hidden, th)

    w1t = jnp.asarray(w1, compute_dtype).T            # (dim, hidden)
    w3t = jnp.asarray(w3, compute_dtype).T            # (dim, hidden)
    w2t = jnp.asarray(w2, compute_dtype).T            # (hidden, dim)
    if h_pad != hidden:
        w1t = jnp.pad(w1t, ((0, 0), (0, h_pad - hidden)))
        w3t = jnp.pad(w3t, ((0, 0), (0, h_pad - hidden)))
        w2t = jnp.pad(w2t, ((0, h_pad - hidden), (0, 0)))

    n_h = h_pad // th
    w13t = jnp.concatenate(
        [w1t.reshape(dim, n_h, th), w3t.reshape(dim, n_h, th)], axis=2
    ).reshape(dim, 2 * h_pad)
    return w13t, w2t, th


def _swiglu_kernel(x_ref, w13_ref, w2_ref, o_ref, acc_ref, *, th):
    # x_ref: (tm, dim); w13_ref: (dim, 2*th) = [w1 tile | w3 tile]; w2_ref: (th, dim)
    # o_ref: (tm, dim); acc_ref: (tm, dim) f32 accumulator across hidden tiles.
    h = pl.program_id(1)

    x = x_ref[...]
    # Fused W1|W3 projection: single MXU push, f32 accumulation.
    h13 = jnp.dot(x, w13_ref[...], preferred_element_type=jnp.float32)
    h1 = h13[:, :th]
    h3 = h13[:, th:]
    # silu(h1) * h3 in f32 (VPU / EUP, hidden under MXU time).
    gated = (h1 * jax.nn.sigmoid(h1)) * h3
    # Partial W2 projection for this hidden tile.
    partial = jnp.dot(gated.astype(w2_ref.dtype), w2_ref[...],
                      preferred_element_type=jnp.float32)

    @pl.when(h == 0)
    def _first():
        acc_ref[...] = partial          # write directly; no zero-init + RMW

    @pl.when(h > 0)
    def _accum():
        acc_ref[...] += partial

    @pl.when(h == pl.num_programs(1) - 1)
    def _store():
        o_ref[...] = acc_ref[...].astype(o_ref.dtype)


@functools.partial(jax.jit, static_argnames=("th", "tm"))
def swiglu_pallas(x, w13t, w2t, *, th, tm=None):
    """x: (..., dim); (w13t, w2t, th) from prepare_swiglu_weights."""
    orig_shape = x.shape
    dim = orig_shape[-1]
    h_pad = w13t.shape[1] // 2
    compute_dtype = w13t.dtype
    x_bytes = jnp.dtype(compute_dtype).itemsize
    w_bytes = x_bytes

    x2d = x.reshape(-1, dim).astype(compute_dtype)
    M = x2d.shape[0]

    if tm is None:
        tm = _select_tm(M, dim, th, x_bytes, w_bytes)
    tm = max(8, _round_up(min(tm, _round_up(M, 8)), 8))

    m_pad = _round_up(M, tm)
    if m_pad != M:
        # Zero row padding is exact; padded rows are sliced off below.
        x2d = jnp.pad(x2d, ((0, m_pad - M), (0, 0)))

    grid = (m_pad // tm, h_pad // th)

    vmem_est = _vmem_estimate(tm, th, dim, x_bytes, w_bytes)
    vmem_limit = int(min(max(vmem_est + (8 << 20), 32 << 20),
                         max(_VMEM_BUDGET, 32 << 20)))

    out = pl.pallas_call(
        functools.partial(_swiglu_kernel, th=th),
        out_shape=jax.ShapeDtypeStruct((m_pad, dim), x.dtype),
        grid_spec=pltpu.PrefetchScalarGridSpec(
            num_scalar_prefetch=0,
            grid=grid,
            in_specs=[
                pl.BlockSpec((tm, dim), lambda i, h: (i, 0)),       # x rows tile
                pl.BlockSpec((dim, 2 * th), lambda i, h: (0, h)),   # [w1|w3] hidden tile
                pl.BlockSpec((th, dim), lambda i, h: (h, 0)),       # w2 hidden tile
            ],
            out_specs=pl.BlockSpec((tm, dim), lambda i, h: (i, 0)),
            scratch_shapes=[pltpu.VMEM((tm, dim), jnp.float32)],
        ),
        compiler_params=pltpu.CompilerParams(
            dimension_semantics=("parallel", "arbitrary"),
            vmem_limit_bytes=vmem_limit,
        ),
    )(x2d, w13t, w2t)

    if m_pad != M:
        out = out[:M]
    return out.reshape(orig_shape)


def _init_linear_weight(key, out_features, in_features, dtype=jnp.float32):
    # PyTorch nn.Linear default: U(-1/sqrt(in), 1/sqrt(in)), shape (out, in).
    bound = 1.0 / (in_features ** 0.5)
    return jax.random.uniform(key, (out_features, in_features),
                              minval=-bound, maxval=bound, dtype=dtype)


if __name__ == "__main__":
    batch, seq = 2, 16
    dim, hidden_dim = 128, 256

    key = jax.random.PRNGKey(0)
    kx, k1, k2, k3 = jax.random.split(key, 4)

    x = jax.random.normal(kx, (batch, seq, dim), dtype=jnp.float32)
    # PyTorch-convention weight shapes (out, in).
    w1 = _init_linear_weight(k1, hidden_dim, dim)      # (hidden, dim)
    w2 = _init_linear_weight(k2, dim, hidden_dim)      # (dim, hidden)
    w3 = _init_linear_weight(k3, hidden_dim, dim)      # (hidden, dim)

    # One-time weight prep (bf16 MXU path, fused W1|W3, hidden padded once).
    w13t, w2t, th = prepare_swiglu_weights(w1, w2, w3)

    y = jax.block_until_ready(swiglu_pallas(x, w13t, w2t, th=th))
    assert y.shape == (batch, seq, dim)

    # Pure-JAX f32 reference (same math as the PyTorch module); bf16 MXU path
    # => loosened tolerance.
    ref = (jax.nn.silu(x @ w1.T) * (x @ w3.T)) @ w2.T
    assert jnp.allclose(y.astype(jnp.float32), ref, atol=2e-2, rtol=2e-2), (
        float(jnp.max(jnp.abs(y.astype(jnp.float32) - ref))))

    # Exercise multi-row-tile + multi-hidden-tile accumulation + ragged M
    # (row padding path) with a forced small th / tm.
    w13t_s, w2t_s, th_s = prepare_swiglu_weights(w1, w2, w3, th=128)
    x_odd = jax.random.normal(kx, (3, 17, dim), dtype=jnp.float32)
    y_odd = jax.block_until_ready(
        swiglu_pallas(x_odd, w13t_s, w2t_s, th=th_s, tm=32))
    ref_odd = (jax.nn.silu(x_odd @ w1.T) * (x_odd @ w3.T)) @ w2.T
    assert jnp.allclose(y_odd.astype(jnp.float32), ref_odd, atol=2e-2, rtol=2e-2)

    print("KERNEL_OK")
</pallas_src>

<mosaic_0001>
module attributes {stable_mosaic.version = 11 : i64} {
  func.func @_swiglu_kernel(%arg0: i32, %arg1: i32, %arg2: memref<16x128xbf16, #tpu.memory_space<vmem>>, %arg3: memref<128x512xbf16, #tpu.memory_space<vmem>>, %arg4: memref<256x128xbf16, #tpu.memory_space<vmem>>, %arg5: memref<16x128xf32, #tpu.memory_space<vmem>>, %arg6: memref<16x128xf32, #tpu.memory_space<vmem>>) attributes {dimension_semantics = [#tpu.dimension_semantics<parallel>, #tpu.dimension_semantics<arbitrary>], iteration_bounds = array<i64: 2, 1>, scalar_prefetch = 0 : i64, scratch_operands = 1 : i64, tpu.core_type = #tpu.core_type<tc>, window_params = [{transform_indices = @transform_0, window_bounds = array<i64: 16, 128>}, {transform_indices = @transform_1, window_bounds = array<i64: 128, 512>}, {transform_indices = @transform_2, window_bounds = array<i64: 256, 128>}, {transform_indices = @transform_3, window_bounds = array<i64: 16, 128>}]} {
    %c0 = arith.constant 0 : index
    %c0_0 = arith.constant 0 : index
    %0 = vector.load %arg2[%c0, %c0_0] : memref<16x128xbf16, #tpu.memory_space<vmem>>, vector<16x128xbf16>
    %c0_1 = arith.constant 0 : index
    %c0_2 = arith.constant 0 : index
    %1 = vector.load %arg3[%c0_1, %c0_2] : memref<128x512xbf16, #tpu.memory_space<vmem>>, vector<128x512xbf16>
    %cst = arith.constant dense<0.000000e+00> : vector<16x512xf32>
    %2 = tpu.matmul %0, %1, %cst {dimension_numbers = #tpu.dot_dimension_numbers<[1], [0], [0], [1], [0, 0, 1, 1], [], []>} : vector<16x128xbf16>, vector<128x512xbf16>, vector<16x512xf32> -> vector<16x512xf32>
    %3 = vector.extract_strided_slice %2 {offsets = [0, 0], sizes = [16, 256], strides = [1, 1]} : vector<16x512xf32> to vector<16x256xf32>
    %4 = vector.extract_strided_slice %2 {offsets = [0, 256], sizes = [16, 256], strides = [1, 1]} : vector<16x512xf32> to vector<16x256xf32>
    %5 = arith.negf %3 : vector<16x256xf32>
    %6 = math.exp %5 : vector<16x256xf32>
    %cst_3 = arith.constant 1.000000e+00 : f32
    %7 = vector.broadcast %cst_3 : f32 to vector<16x256xf32>
    %8 = arith.addf %7, %6 : vector<16x256xf32>
    %9 = arith.divf %7, %8 : vector<16x256xf32>
    %10 = arith.mulf %3, %9 : vector<16x256xf32>
    %11 = arith.mulf %10, %4 : vector<16x256xf32>
    %12 = arith.truncf %11 : vector<16x256xf32> to vector<16x256xbf16>
    %c0_4 = arith.constant 0 : index
    %c0_5 = arith.constant 0 : index
    %13 = vector.load %arg4[%c0_4, %c0_5] : memref<256x128xbf16, #tpu.memory_space<vmem>>, vector<256x128xbf16>
    %cst_6 = arith.constant dense<0.000000e+00> : vector<16x128xf32>
    %14 = tpu.matmul %12, %13, %cst_6 {dimension_numbers = #tpu.dot_dimension_numbers<[1], [0], [0], [1], [0, 0, 1, 1], [], []>} : vector<16x256xbf16>, vector<256x128xbf16>, vector<16x128xf32> -> vector<16x128xf32>
    %c0_i32 = arith.constant 0 : i32
    %15 = arith.cmpi eq, %arg1, %c0_i32 : i32
    %16 = arith.extui %15 : i1 to i32
    %c0_i32_7 = arith.constant 0 : i32
    %17 = arith.cmpi ne, %16, %c0_i32_7 : i32
    scf.if %17 {
      %c0_12 = arith.constant 0 : index
      %c0_13 = arith.constant 0 : index
      %24 = vector.load %arg6[%c0_12, %c0_13] : memref<16x128xf32, #tpu.memory_space<vmem>>, vector<16x128xf32>
      tpu.vector_store %arg6[%c0_12, %c0_13], %14 {strides = array<i32>} : memref<16x128xf32, #tpu.memory_space<vmem>>, vector<16x128xf32>,
    } else {
    }
    %c0_i32_8 = arith.constant 0 : i32
    %18 = arith.cmpi sgt, %arg1, %c0_i32_8 : i32
    %19 = arith.extui %18 : i1 to i32
    %c0_i32_9 = arith.constant 0 : i32
    %20 = arith.cmpi ne, %19, %c0_i32_9 : i32
    scf.if %20 {
      %c0_12 = arith.constant 0 : index
      %c0_13 = arith.constant 0 : index
      %24 = vector.load %arg6[%c0_12, %c0_13] : memref<16x128xf32, #tpu.memory_space<vmem>>, vector<16x128xf32>
      %25 = arith.addf %24, %14 : vector<16x128xf32>
      %c0_14 = arith.constant 0 : index
      %c0_15 = arith.constant 0 : index
      %26 = vector.load %arg6[%c0_14, %c0_15] : memref<16x128xf32, #tpu.memory_space<vmem>>, vector<16x128xf32>
      tpu.vector_store %arg6[%c0_14, %c0_15], %25 {strides = array<i32>} : memref<16x128xf32, #tpu.memory_space<vmem>>, vector<16x128xf32>,
    } else {
    }
    %c0_i32_10 = arith.constant 0 : i32
    %21 = arith.cmpi eq, %arg1, %c0_i32_10 : i32
    %22 = arith.extui %21 : i1 to i32
    %c0_i32_11 = arith.constant 0 : i32
    %23 = arith.cmpi ne, %22, %c0_i32_11 : i32
    scf.if %23 {
      %c0_12 = arith.constant 0 : index
      %c0_13 = arith.constant 0 : index
      %24 = vector.load %arg6[%c0_12, %c0_13] : memref<16x128xf32, #tpu.memory_space<vmem>>, vector<16x128xf32>
      %c0_14 = arith.constant 0 : index
      %c0_15 = arith.constant 0 : index
      %25 = vector.load %arg5[%c0_14, %c0_15] : memref<16x128xf32, #tpu.memory_space<vmem>>, vector<16x128xf32>
      tpu.vector_store %arg5[%c0_14, %c0_15], %24 {strides = array<i32>} : memref<16x128xf32, #tpu.memory_space<vmem>>, vector<16x128xf32>,
    } else {
    }
    return
  }
  func.func @transform_0(%arg0: i32, %arg1: i32) -> (i32, i32) {
    %c0_i32 = arith.constant 0 : i32
    %c0_i32_0 = arith.constant 0 : i32
    return %arg0, %c0_i32 : i32, i32
  }
  func.func @transform_1(%arg0: i32, %arg1: i32) -> (i32, i32) {
    %c0_i32 = arith.constant 0 : i32
    %c0_i32_0 = arith.constant 0 : i32
    return %c0_i32, %arg1 : i32, i32
  }
  func.func @transform_2(%arg0: i32, %arg1: i32) -> (i32, i32) {
    %c0_i32 = arith.constant 0 : i32
    %c0_i32_0 = arith.constant 0 : i32
    return %arg1, %c0_i32 : i32, i32
  }
  func.func @transform_3(%arg0: i32, %arg1: i32) -> (i32, i32) {
    %c0_i32 = arith.constant 0 : i32
    %c0_i32_0 = arith.constant 0 : i32
    return %arg0, %c0_i32 : i32, i32
  }
}

</mosaic_0001>

<bundles_post_ra>
// kernel: swiglu_pallas.1
= control target key start
LH: loop header
LB: loop body
LE: loop exit
PB: predicated region body
PF: predicated region fallthrough
CT: control target
= control target key end

     0   :  { %8 = vsyncpa [#allocation4], 0  ;;  %s1572_s0 = inlined_call_operand.vmem [shape: bf16[32,128], index: 0, kind: input, shape index: {}]   ;;  %s1573_s1 = inlined_call_operand.hbm [shape: bf16[128,512], index: 1, kind: input, shape index: {}]   ;;  %s1574_s2 = inlined_call_operand.hbm [shape: bf16[256,128], index: 2, kind: input, shape index: {}]   ;;  %s1575_s3 = inlined_call_operand.hbm [shape: f32[32,128], index: 3, kind: output, shape index: {}]  }
   0x1   :  { %9 = vsyncpa [#allocation7], 0 }
   0x2   :  { %10 = vsyncpa [#allocation5], 0 }
   0x3   :  { %12 = vsyncpa [#allocation5 + $0x1], 0  ;;  %s1410_s12 = smov 0   ;;  %s1412_s13 = smov 0  }
   0x4   :  { %s1414_s14 = smov 0   ;;  %s1416_s15 = smov 0  }
   0x5   :  { %s1418_s16 = smov 0   ;;  %s1420_s17 = smov 0  }
   0x6 LB: > { %s869_s18 = sadd.s32 4294967295, %s1380_s17   ;;  %s870_s19 = sadd.s32 4294967294, %s1380_s17   ;;  %s1380_s17 = sphi %s1420_s17, %s18_s17   ;;  %s1376_s16 = sphi %s1418_s16, %s1589_s16   ;;  %s1372_s15 = sphi %s1416_s15, %s1588_s15   ;;  %s1368_s14 = sphi %s1414_s14, %s1587_s14   ;;  %s1364_s13 = sphi %s1412_s13, %s1586_s13   ;;  %s1360_s12 = sphi %s1410_s12, %s1585_s12  }
   0x7   : > { %s30_s20 = sadd.s32 1, %s1376_s16  ;;  %s115_s21 = sadd.s32 1, %s1368_s14 }
   0x8   : > { %p32_p0 = scmp.ge.s32.totalorder %s30_s20, 2  ;;  %p125_p1 = scmp.ne.s32.totalorder %s1368_s14, %s1364_s13 }
   0x9   : > { %p126_p2 = scmp.eq.s32.totalorder %s869_s18, 1  ;;  %p131_p3 = scmp.ne.s32.totalorder %s1364_s13, %s1360_s12 }
   0xa   : > { %s1591_s20 = smov (%p32_p0, %s30_s20), 0  ;;  %p132_p5 = scmp.eq.s32.totalorder %s870_s19, 1 }
   0xb   : > { %p1450_p4 = por %p126_p2, %p125_p1  ;;  %s112_s23 = ssub.s32 %s1376_s16, %s1591_s20 }
   0xc   : > { %p871_p6 = scmp.ge.s32.totalorder %s1380_s17, 1  ;;  %p113_p7 = scmp.eq.s32.totalorder %s112_s23, 0 }
   0xd   : > { %p1457_p8 = por %p132_p5, %p131_p3  ;;  %p139_p9 = scmp.lt.s32.totalorder %s1380_s17, 3 }
   0xe   : > { %s1463_s25 = scalar_select %p113_p7, %s1368_s14, %s115_s21  }
   0xf   : > { %p1465_p10 = pnand %p871_p6, %p139_p9  ;;  %p1469_p11 = scmp.eq.s32.totalorder %s869_s18, 0 }
  0x10   : > { %s153_s30 = sshll.u32 %s1573_s1, 4  ;;  %s1382_s4 = smov [#allocation3]   ;;  %s154_s30 = int_to_ptr.hbm [resolvable:$true] %s153_s30 }
  0x11   : > { %p1146_p12 = pneg %p1465_p10  ;;  %s155_s5 = sshll.u32 %s1382_s4, 4  ;;  %s156_s5 = int_to_ptr.vmem [resolvable:$true] %s155_s5 }
  0x12   : > { %s170_s8 = sshll.u32 %s1574_s2, 4  ;;  %s1383_s9 = smov 256   ;;  %s171_s8 = int_to_ptr.hbm [resolvable:$true] %s170_s8 }
  0x13   : > { %p1147_p13 = pnand %p1469_p11, %p1146_p12  ;;  %s1384_s10 = smov 16  }
  0x14   : > { %s1385_s11 = smov [#allocation6]   ;;  %s1386_s19 = smov 64  }
  0x15   : > { %1149 = dma.hbm_to_vmem [thread:$0]  (!%p1147_p13), %s154_s30, 4096, %s156_s5, [#allocation4], %s1383_s9, %s1383_s9, %s1384_s10  }
  0x16   : > { %s172_s18 = sshll.u32 %s1385_s11, 4  ;;  %s1387_s21 = smov 4   ;;  %s173_s18 = int_to_ptr.vmem [resolvable:$true] %s172_s18 }
  0x17   : > { %1152 = dma.hbm_to_vmem [thread:$0]  (!%p1147_p13), %s171_s8, 2048, %s173_s18, [#allocation7], %s1386_s19, %s1386_s19, %s1387_s21  }
  0x18   : > { %197 = sbr.rel (%p1465_p10) target bundleno = 377 (0x179), region = 32 }
  0x1d   : > { %1347 = dma.done.wait (%p1469_p11), [#allocation4], 4096  }
  0x1e   : > { %1349 = vsyncadd (%p1469_p11), [#allocation4], 4294963200 }
  0x1f   : > { %1351 = dma.done.wait (%p1469_p11), [#allocation7], 2048  }
  0x20   : > { %1353 = vsyncadd (%p1469_p11), [#allocation7], 4294965248  ;;  %v999_v0 = vld [vmem:[#allocation3 + $0xe0] sm:$0xf]  ;;  %v1117_v1 = vld [vmem:[#allocation3 + $0xec] sm:$0xf0] }
  0x21   : > { %v1115_v2 = vld [vmem:[#allocation3 + $0xe4] sm:$0xf]  ;;  %v1000_v3 = vor.u32 %v1117_v1, %v999_v0  ;;  %v1001_v4 = vld [vmem:[#allocation3 + $0xf0] sm:$0xf0]  ;;  %v983_v5 = vld [vmem:[#allocation3 + $0xc0] sm:$0xf] }
  0x22   : > { %v1113_v6 = vld [vmem:[#allocation3 + $0xcc] sm:$0xf0]  ;;  %v1004_v7 = vor.u32 %v1115_v2, %v1001_v4  ;;  %v1111_v8 = vld [vmem:[#allocation3 + $0xc4] sm:$0xf]  ;;  %v985_v9 = vld [vmem:[#allocation3 + $0xd0] sm:$0xf0] }
  0x23   : > { %436 = vmatpush.bf16.msra.mxu0 %v1000_v3  ;;  %v984_v10 = vor.u32 %v1113_v6, %v983_v5  ;;  %v988_v11 = vor.u32 %v1111_v8, %v985_v9  ;;  %v967_v12 = vld [vmem:[#allocation3 + $0xa0] sm:$0xf]  ;;  %v1109_v13 = vld [vmem:[#allocation3 + $0xac] sm:$0xf0]  ;;  %v1107_v14 = vld [vmem:[#allocation3 + $0xa4] sm:$0xf] }
  0x24   : > { %450 = vmatpush.bf16.msra.mxu1 %v1004_v7  ;;  %v969_v15 = vld [vmem:[#allocation3 + $0xb0] sm:$0xf0]  ;;  %v1007_v16 = vld [vmem:[#allocation3 + $0xe8] sm:$0xf]  ;;  %v968_v17 = vor.u32 %v1109_v13, %v967_v12  ;;  %v1118_v18 = vld [vmem:[#allocation3 + $0xf4] sm:$0xf0] }
  0x25   : > { %v1116_v19 = vld [vmem:[#allocation3 + $0xec] sm:$0xf]  ;;  %v1009_v20 = vld [vmem:[#allocation3 + $0xf8] sm:$0xf0]  ;;  %v972_v21 = vor.u32 %v1107_v14, %v969_v15  ;;  %v951_v22 = vld [vmem:[#allocation3 + $0x80] sm:$0xf]  ;;  %v1008_v25 = vor.u32 %v1118_v18, %v1007_v16 }
  0x26   : > { %v1105_v23 = vld [vmem:[#allocation3 + $0x8c] sm:$0xf0]  ;;  %v1103_v24 = vld [vmem:[#allocation3 + $0x84] sm:$0xf]  ;;  %v1012_v26 = vor.u32 %v1116_v19, %v1009_v20  ;;  %v953_v27 = vld [vmem:[#allocation3 + $0x90] sm:$0xf0] }
  0x27   : > { %437 = vmatpush.bf16.msra.mxu0 %v984_v10  ;;  %v991_v28 = vld [vmem:[#allocation3 + $0xc8] sm:$0xf]  ;;  %v1114_v29 = vld [vmem:[#allocation3 + $0xd4] sm:$0xf0]  ;;  %464 = vmatpush.bf16.msra.mxu2 %v1008_v25  ;;  %v1112_v31 = vld [vmem:[#allocation3 + $0xcc] sm:$0xf]  ;;  %v952_v33 = vor.u32 %v1105_v23, %v951_v22  ;;  %v956_v37 = vor.u32 %v1103_v24, %v953_v27 }
  0x28   : > { %451 = vmatpush.bf16.msra.mxu1 %v988_v11  ;;  %478 = vmatpush.bf16.msra.mxu3 %v1012_v26  ;;  %v992_v30 = vor.u32 %v1114_v29, %v991_v28  ;;  %v993_v32 = vld [vmem:[#allocation3 + $0xd8] sm:$0xf0]  ;;  %v935_v34 = vld [vmem:[#allocation3 + $0x60] sm:$0xf]  ;;  %v1101_v35 = vld [vmem:[#allocation3 + $0x6c] sm:$0xf0] }
  0x29   : > { %v996_v36 = vor.u32 %v1112_v31, %v993_v32  ;;  %s879_s23 = sshll.u32 %s1372_s15, 1  ;;  %v975_v38 = vld [vmem:[#allocation3 + $0xa8] sm:$0xf]  ;;  %v1110_v39 = vld [vmem:[#allocation3 + $0xb4] sm:$0xf0]  ;;  %v936_v47 = vor.u32 %v1101_v35, %v935_v34  ;;  %v1125_v35 = vld [vmem:[#allocation6 + $0x30] sm:$0xff] }
  0x2a   : > { %v1108_v40 = vld [vmem:[#allocation3 + $0xac] sm:$0xf]  ;;  %v1099_v41 = vld [vmem:[#allocation3 + $0x64] sm:$0xf]  ;;  %v937_v42 = vld [vmem:[#allocation3 + $0x70] sm:$0xf0]  ;;  %v976_v44 = vor.u32 %v1110_v39, %v975_v38 }
  0x2b   : > { %438 = vmatpush.bf16.msra.mxu0 %v968_v17  ;;  %v977_v43 = vld [vmem:[#allocation3 + $0xb8] sm:$0xf0]  ;;  %465 = vmatpush.bf16.msra.mxu2 %v992_v30  ;;  %v959_v46 = vld [vmem:[#allocation3 + $0x88] sm:$0xf]  ;;  %v1106_v48 = vld [vmem:[#allocation3 + $0x94] sm:$0xf0]  ;;  %v940_v51 = vor.u32 %v1099_v41, %v937_v42 }
  0x2c   : > { %452 = vmatpush.bf16.msra.mxu1 %v972_v21  ;;  %479 = vmatpush.bf16.msra.mxu3 %v996_v36  ;;  %v980_v45 = vor.u32 %v1108_v40, %v977_v43  ;;  %v1104_v49 = vld [vmem:[#allocation3 + $0x8c] sm:$0xf]  ;;  %v961_v50 = vld [vmem:[#allocation3 + $0x98] sm:$0xf0]  ;;  %v919_v52 = vld [vmem:[#allocation3 + $0x40] sm:$0xf]  ;;  %v960_v56 = vor.u32 %v1106_v48, %v959_v46 }
  0x2d   : > { %v1097_v53 = vld [vmem:[#allocation3 + $0x4c] sm:$0xf0]  ;;  %p1496_p0 = scmp.lt.s32.totalorder %s879_s23, 3  ;;  %v1095_v54 = vld [vmem:[#allocation3 + $0x44] sm:$0xf]  ;;  %v964_v57 = vor.u32 %v1104_v49, %v961_v50  ;;  %v1134_v34 = vld [vmem:[#allocation6 + $0x78] sm:$0xff] }
  0x2e   : > { %v921_v55 = vld [vmem:[#allocation3 + $0x50] sm:$0xf0]  ;;  %v943_v58 = vld [vmem:[#allocation3 + $0x68] sm:$0xf]  ;;  %v920_v59 = vor.u32 %v1097_v53, %v919_v52  ;;  %v1102_v60 = vld [vmem:[#allocation3 + $0x74] sm:$0xf0] }
  0x2f   : > { %439 = vmatpush.bf16.msra.mxu0 %v952_v33  ;;  %466 = vmatpush.bf16.msra.mxu2 %v976_v44  ;;  %v1100_v61 = vld [vmem:[#allocation3 + $0x6c] sm:$0xf]  ;;  %v945_v62 = vld [vmem:[#allocation3 + $0x78] sm:$0xf0]  ;;  %v924_v63 = vor.u32 %v1095_v54, %v921_v55  ;;  %v903_v0 = vld [vmem:[#allocation3 + $0x20] sm:$0xf]  ;;  %v944_v4 = vor.u32 %v1102_v60, %v943_v58 }
  0x30   : > { %453 = vmatpush.bf16.msra.mxu1 %v956_v37  ;;  %480 = vmatpush.bf16.msra.mxu3 %v980_v45  ;;  %v1093_v1 = vld [vmem:[#allocation3 + $0x2c] sm:$0xf0]  ;;  %s1593_s23 = smov (!%p1496_p0, %s879_s23), 3  ;;  %v1091_v2 = vld [vmem:[#allocation3 + $0x24] sm:$0xf]  ;;  %v948_v5 = vor.u32 %v1100_v61, %v945_v62  ;;  %v1126_v33 = vld [vmem:[#allocation6 + $0x38] sm:$0xff] }
  0x31   : > { %v905_v3 = vld [vmem:[#allocation3 + $0x30] sm:$0xf0]  ;;  %v927_v6 = vld [vmem:[#allocation3 + $0x48] sm:$0xf]  ;;  %v904_v7 = vor.u32 %v1093_v1, %v903_v0  ;;  %v1098_v8 = vld [vmem:[#allocation3 + $0x54] sm:$0xf0] }
  0x32   : > { %v1096_v9 = vld [vmem:[#allocation3 + $0x4c] sm:$0xf]  ;;  %v929_v10 = vld [vmem:[#allocation3 + $0x58] sm:$0xf0]  ;;  %v908_v11 = vor.u32 %v1091_v2, %v905_v3  ;;  %v887_v12 = vld [vmem:[#allocation3] sm:$0xf]  ;;  %v928_v16 = vor.u32 %v1098_v8, %v927_v6 }
  0x33   : > { %440 = vmatpush.bf16.msra.mxu0 %v936_v47  ;;  %467 = vmatpush.bf16.msra.mxu2 %v960_v56  ;;  %v1089_v13 = vld [vmem:[#allocation3 + $0xc] sm:$0xf0]  ;;  %s880_s27 = sshll.u32 %s1593_s23, 2  ;;  %v1087_v14 = vld [vmem:[#allocation3 + $0x4] sm:$0xf]  ;;  %v932_v17 = vor.u32 %v1096_v9, %v929_v10  ;;  %v1124_v37 = vld [vmem:[#allocation6 + $0x28] sm:$0xff] }
  0x34   : > { %454 = vmatpush.bf16.msra.mxu1 %v940_v51  ;;  %481 = vmatpush.bf16.msra.mxu3 %v964_v57  ;;  %v889_v15 = vld [vmem:[#allocation3 + $0x10] sm:$0xf0]  ;;  %v888_v18 = vor.u32 %v1089_v13, %v887_v12  ;;  %s231_s30 = scalar_lea.vmem %s1572_s0, %s880_s27  ;;  %v911_v19 = vld [vmem:[#allocation3 + $0x28] sm:$0xf]  ;;  %v1094_v20 = vld [vmem:[#allocation3 + $0x34] sm:$0xf0] }
  0x35   : > { %v892_v21 = vor.u32 %v1087_v14, %v889_v15  ;;  %v1092_v22 = vld [vmem:[#allocation3 + $0x2c] sm:$0xf]  ;;  %v913_v23 = vld [vmem:[#allocation3 + $0x38] sm:$0xf0]  ;;  %v1086_v24 = vld [vmem:[%s231_s30] sm:$0xff]  ;;  %v912_v25 = vor.u32 %v1094_v20, %v911_v19  ;;  %s224_s4 = sand.u32 1, %s1364_s13  }
  0x36   : > { %v916_v26 = vor.u32 %v1092_v22, %v913_v23  ;;  %v895_v27 = vld [vmem:[#allocation3 + $0x8] sm:$0xf]  ;;  %v1090_v28 = vld [vmem:[#allocation3 + $0x14] sm:$0xf0]  ;;  %v1088_v29 = vld [vmem:[#allocation3 + $0xc] sm:$0xf] }
  0x37   : > { %441 = vmatpush.bf16.msra.mxu0 %v920_v59  ;;  %468 = vmatpush.bf16.msra.mxu2 %v944_v4  ;;  %v897_v30 = vld [vmem:[#allocation3 + $0x18] sm:$0xf0]  ;;  %v896_v31 = vor.u32 %v1090_v28, %v895_v27  ;;  %v1133_v36 = vld [vmem:[#allocation6 + $0x70] sm:$0xff]  ;;  %v1132_v38 = vld [vmem:[#allocation6 + $0x68] sm:$0xff]  ;;  %s878_s5 = sshll.u32 %s224_s4, 4  ;;  %s1135_s6 = sshll.u32 %s1372_s15, 4 }
  0x38   : > { %455 = vmatpush.bf16.msra.mxu1 %v924_v63  ;;  %482 = vmatpush.bf16.msra.mxu3 %v948_v5  ;;  %v900_v32 = vor.u32 %v1088_v29, %v897_v30  ;;  %v1123_v39 = vld [vmem:[#allocation6 + $0x20] sm:$0xff]  ;;  %v1122_v41 = vld [vmem:[#allocation6 + $0x18] sm:$0xff]  ;;  %v1121_v47 = vld [vmem:[#allocation6 + $0x10] sm:$0xff]  ;;  %s226_s7 = scalar_lea.vmem [#allocation8], %s878_s5  ;;  %s769_s10 = scalar_lea.hbm %s1575_s3, %s1135_s6 }
  0x39   : > { %v1131_v40 = vld [vmem:[#allocation6 + $0x60] sm:$0xff]  ;;  %v1130_v42 = vld [vmem:[#allocation6 + $0x58] sm:$0xff]  ;;  %v1129_v48 = vld [vmem:[#allocation6 + $0x50] sm:$0xff]  ;;  %s770_s11 = sshll.u32 %s226_s7, 4  ;;  %s772_s18 = sshll.u32 %s769_s10, 4  ;;  %s771_s11 = int_to_ptr.vmem [resolvable:$true] %s770_s11  ;;  %s773_s18 = int_to_ptr.hbm [resolvable:$true] %s772_s18 }
  0x3a   : > { %v1120_v49 = vld [vmem:[#allocation6 + $0x8] sm:$0xff]  ;;  %v1119_v58 = vld [vmem:[#allocation6] sm:$0xff]  ;;  %s758_s19 = scalar_lea.sflag [#allocation5], %s224_s4  ;;  %s1308_s21 = sshra.s32 %s773_s18, 4  ;;  %s1309_s21 = int_to_ptr.hbm [resolvable:$true] %s1308_s21 }
  0x3b   : > { %442 = vmatpush.bf16.msra.mxu0 %v904_v7  ;;  %469 = vmatpush.bf16.msra.mxu2 %v928_v16  ;;  %v1128_v50 = vld [vmem:[#allocation6 + $0x48] sm:$0xff]  ;;  %v1127_v59 = vld [vmem:[#allocation6 + $0x40] sm:$0xff]  ;;  %s1310_s15 = scalar_lea.hbm %s1309_s21, 16  ;;  %s1314_s27 = scalar_lea.hbm %s1575_s3, 32 }
  0x3c   : > { %456 = vmatpush.bf16.msra.mxu1 %v908_v11  ;;  %483 = vmatpush.bf16.msra.mxu3 %v932_v17  ;;  %p1311_p1 = scmp.ne.s32.totalorder %s1309_s21, %s1310_s15  ;;  %p1315_p5 = scmp.lt.s32.totalorder %s1309_s21, %s1575_s3 }
  0x3d   : > { %p1316_p6 = scmp.lt.s32.totalorder %s1314_s27, %s1310_s15 }
  0x3e   : > { %p1312_p2 = pnand %p1311_p1, %p1450_p4 }
  0x3f   : > { %443 = vmatpush.bf16.msra.mxu0 %v888_v18  ;;  %470 = vmatpush.bf16.msra.mxu2 %v912_v25  ;;  %p1317_p7 = por %p1316_p6, %p1315_p5 }
  0x40   : > { %457 = vmatpush.bf16.msra.mxu1 %v892_v21  ;;  %484 = vmatpush.bf16.msra.mxu3 %v916_v26  ;;  %p1313_p3 = pneg %p1312_p2 }
  0x42   : > { %444 = vmatmul.bf16.vlgmr.msra.gmra.mxu0 %v1086_v24  ;;  %p1318_p9 = pnand %p1317_p7, %p1313_p3 }
  0x43   : > { %458 = vmatmul.bf16.vlgmr.msra.gmra.mxu1 %v1086_v24  ;;  %471 = vmatpush.bf16.msra.mxu2 %v896_v31 }
  0x44   : > { %485 = vmatpush.bf16.msra.mxu3 %v900_v32  ;;  %706 = vmatpush.bf16.msrb.mxu0 %v1126_v33 }
  0x45   : > { %720 = vmatpush.bf16.msrb.mxu1 %v1134_v34 }
  0x46   : > { %472 = vmatmul.bf16.vlgmr.msra.gmra.mxu2 %v1086_v24 }
  0x47   : > { %486 = vmatmul.bf16.vlgmr.msra.gmra.mxu3 %v1086_v24 }
  0x48   : > { %707 = vmatpush.bf16.msrb.mxu0 %v1125_v35 }
  0x49   : > { %721 = vmatpush.bf16.msrb.mxu1 %v1133_v36 }
  0x4c   : > { %708 = vmatpush.bf16.msrb.mxu0 %v1124_v37 }
  0x4d   : > { %722 = vmatpush.bf16.msrb.mxu1 %v1132_v38 }
  0x50   : > { %709 = vmatpush.bf16.msrb.mxu0 %v1123_v39 }
  0x51   : > { %723 = vmatpush.bf16.msrb.mxu1 %v1131_v40 }
  0x54   : > { %710 = vmatpush.bf16.msrb.mxu0 %v1122_v41 }
  0x55   : > { %724 = vmatpush.bf16.msrb.mxu1 %v1130_v42 }
  0x58   : > { %711 = vmatpush.bf16.msrb.mxu0 %v1121_v47 }
  0x59   : > { %725 = vmatpush.bf16.msrb.mxu1 %v1129_v48 }
  0x5c   : > { %712 = vmatpush.bf16.msrb.mxu0 %v1120_v49 }
  0x5d   : > { %726 = vmatpush.bf16.msrb.mxu1 %v1128_v50 }
  0x60   : > { %713 = vmatpush.bf16.msrb.mxu0 %v1119_v58 }
  0x61   : > { %727 = vmatpush.bf16.msrb.mxu1 %v1127_v59 }
  0xbf   : > { %v1507_v43 = vpop.f32.mrf.mxu0 }
  0xc0   : > { %v1013_v44 = vmul.f32 -1.442695, %v1507_v43  ;;  %v1510_v45 = vpop.f32.mrf.mxu1 }
  0xc1   : > { %v1014_v46 = vmul.f32 -1.442695, %v1510_v45 }
  0xc2   : > { %1218 = vpow2.f32 %v1013_v44 }
  0xc3   : > { %1220 = vpow2.f32 %v1014_v46 }
  0xc7   : > { %v1513_v51 = vpop.f32.mrf.mxu0 }
  0xc8   : > { %v1219_v52 = vpop.eup %1218  ;;  %v1015_v53 = vmul.f32 -1.442695, %v1513_v51  ;;  %v1516_v54 = vpop.f32.mrf.mxu1 }
  0xc9   : > { %v1221_v55 = vpop.eup %1220  ;;  %v504_v56 = vadd.f32 1.0, %v1219_v52  ;;  %v1016_v57 = vmul.f32 -1.442695, %v1516_v54  ;;  %v473_v17 = vpop.f32.mrf.mxu2 }
  0xca   : > { %v505_v60 = vadd.f32 1.0, %v1221_v55  ;;  %1222 = vpow2.f32 %v1015_v53  ;;  %v487_v28 = vpop.f32.mrf.mxu3 }
  0xcb   : > { %1224 = vrcp.f32 %v504_v56  ;;  %v519_v11 = vand.u32 2147483648, %v504_v56  ;;  %vm513_vm1 = vweird.f32 %v504_v56  ;;  %v517_v12 = vand.u32 2147483647, %v504_v56 }
  0xcc   : > { %1226 = vrcp.f32 %v505_v60  ;;  %v532_v16 = vand.u32 2147483647, %v505_v60  ;;  %v534_v20 = vand.u32 2147483648, %v505_v60  ;;  %vm528_vm4 = vweird.f32 %v505_v60 }
  0xcd   : > { %1228 = vpow2.f32 %v1016_v57  ;;  %v520_v22 = vor.u32 1.1754944e-38, %v519_v11  ;;  %vm518_vm5 = vcmp.eq.f32.partialorder %v517_v12, 8.507059e+37 }
  0xce   : > { %vm533_vm8 = vcmp.eq.f32.partialorder %v532_v16, 8.507059e+37  ;;  %v535_v32 = vor.u32 1.1754944e-38, %v534_v20 }
  0xd0   : > { %v1223_v61 = vpop.eup %1222 }
  0xd1   : > { %v1225_v62 = vpop.eup %1224  ;;  %v506_v63 = vadd.f32 1.0, %v1223_v61  ;;  %v475_v49 = vpop.f32.mrf.mxu2 }
  0xd2   : > { %v1227_v0 = vpop.eup %1226  ;;  %v509_v1 = vmul.f32 %v1225_v62, %v504_v56  ;;  %vm514_vm0 = vweird.f32 %v1225_v62  ;;  %v489_v56 = vpop.f32.mrf.mxu3 }
  0xd3   : > { %v1229_v2 = vpop.eup %1228  ;;  %v524_v3 = vmul.f32 %v1227_v0, %v505_v60  ;;  %1230 = vrcp.f32 %v506_v63  ;;  %vm1519_vm2 = vmor %vm513_vm1, %vm514_vm0  ;;  %vm529_vm3 = vweird.f32 %v1227_v0  ;;  %v549_v23 = vand.u32 2147483648, %v506_v63 }
  0xd4   : > { %v510_v4 = vsub.f32 1.0, %v509_v1  ;;  %v507_v5 = vadd.f32 1.0, %v1229_v2  ;;  %vm1525_vm6 = vmor %vm528_vm4, %vm529_vm3  ;;  %v547_v27 = vand.u32 2147483647, %v506_v63  ;;  %vm543_vm9 = vweird.f32 %v506_v63 }
  0xd5   : > { %v525_v6 = vsub.f32 1.0, %v524_v3  ;;  %v550_v35 = vor.u32 1.1754944e-38, %v549_v23 }
  0xd6   : > { %v511_v7 = vmul.f32 %v1225_v62, %v510_v4  ;;  %1232 = vrcp.f32 %v507_v5  ;;  %v564_v34 = vand.u32 2147483648, %v507_v5  ;;  %v562_v37 = vand.u32 2147483647, %v507_v5 }
  0xd7   : > { %v526_v8 = vmul.f32 %v1227_v0, %v525_v6  ;;  %vm548_vm12 = vcmp.eq.f32.partialorder %v547_v27, 8.507059e+37  ;;  %vm558_vm13 = vweird.f32 %v507_v5 }
  0xd8   : > { %v512_v9 = vadd.f32 %v1225_v62, %v511_v7  ;;  %v565_v46 = vor.u32 1.1754944e-38, %v564_v34  ;;  %vm563_vm15 = vcmp.eq.f32.partialorder %v562_v37, 8.507059e+37 }
  0xd9   : > { %v1231_v10 = vpop.eup %1230  ;;  %v527_v15 = vadd.f32 %v1227_v0, %v526_v8 }
  0xda   : > { %v539_v13 = vmul.f32 %v1231_v10, %v506_v63  ;;  %v516_v19 = vsel %vm1519_vm2, %v1225_v62, %v512_v9  ;;  %vm544_vm7 = vweird.f32 %v1231_v10 }
  0xdb   : > { %v521_v29 = vsel %vm518_vm5, %v520_v22, %v516_v19  ;;  %v531_v30 = vsel %vm1525_vm6, %v1227_v0, %v527_v15  ;;  %vm545_vm10 = vmor %vm543_vm9, %vm544_vm7 }
  0xdc   : > { %v1233_v18 = vpop.eup %1232  ;;  %v540_v21 = vsub.f32 1.0, %v539_v13  ;;  %v568_v38 = vmul.f32 %v521_v29, %v1507_v43  ;;  %v536_v39 = vsel %vm533_vm8, %v535_v32, %v531_v30 }
  0xdd   : > { %v554_v24 = vmul.f32 %v1233_v18, %v507_v5  ;;  %vm559_vm11 = vweird.f32 %v1233_v18  ;;  %v569_v47 = vmul.f32 %v536_v39, %v1510_v45 }
  0xde   : > { %v541_v26 = vmul.f32 %v1231_v10, %v540_v21  ;;  %vm560_vm14 = vmor %vm558_vm13, %vm559_vm11  ;;  %v572_v52 = vmul.f32 %v568_v38, %v473_v17 }
  0xdf   : > { %v555_v31 = vsub.f32 1.0, %v554_v24  ;;  %v573_v57 = vmul.f32 %v569_v47, %v487_v28 }
  0xe0   : > { %v542_v33 = vadd.f32 %v1231_v10, %v541_v26 }
  0xe1   : > { %v556_v36 = vmul.f32 %v1233_v18, %v555_v31 }
  0xe2   : > { %v546_v40 = vsel %vm545_vm10, %v1231_v10, %v542_v33 }
  0xe3   : > { %v551_v41 = vsel %vm548_vm12, %v550_v35, %v546_v40  ;;  %v557_v42 = vadd.f32 %v1233_v18, %v556_v36 }
  0xe4   : > { %v570_v44 = vmul.f32 %v551_v41, %v1513_v51 }
  0xe5   : > { %v561_v48 = vsel %vm560_vm14, %v1233_v18, %v557_v42 }
  0xe6   : > { %v566_v50 = vsel %vm563_vm15, %v565_v46, %v561_v48  ;;  %v574_v43 = vmul.f32 %v570_v44, %v475_v49 }
  0xe7   : > { %v571_v53 = vmul.f32 %v566_v50, %v1516_v54 }
  0xe8   : > { %v576_v55 = vpack.c.bf16 %v574_v43, %v572_v52 }
  0xe9   : > { %v575_v58 = vmul.f32 %v571_v53, %v489_v56 }
  0xea   : > { %714 = vmatmul.bf16.vlgmr.msrb.gmra.mxu0 %v576_v55 }
  0xeb   : > { %v577_v51 = vpack.c.bf16 %v575_v58, %v573_v57 }
  0xed   : > { %728 = vmatmul.bf16.vlgmr.msrb.gmra.mxu1 %v577_v51 }
 0x167   : > { %v715_v59 = vpop.f32.mrf.mxu0 }
 0x16a   : > { %v729_v45 = vpop.f32.mrf.mxu1 }
 0x16b   : > { %v730_v60 = vadd.f32 %v729_v45, %v715_v59 }
 0x16d   : > { %755 = vst [vmem:[%s226_s7] sm:$0xff] %v730_v60 }
 0x16f   : > { %v717_v54 = vpop.f32.mrf.mxu0 }
 0x172   : > { %v731_v61 = vpop.f32.mrf.mxu1 }
 0x173   : > { %v732_v62 = vadd.f32 %v731_v61, %v717_v54 }
 0x175   : > { %756 = vst [vmem:[%s226_s7 + $0x8] sm:$0xff] %v732_v62 }
 0x176   : > { %1321 = shalt.err (!%p1318_p9)
}
 0x177   : > { %s1388_s30 = smov 128   ;;  %s1389_s4 = smov 8  }
 0x178   : > { %1144 = dma.vmem_to_hbm [thread:$0]  (%p1450_p4), %s771_s11, 256, %s773_s18, %s758_s19, %s1388_s30, %s1388_s30, %s1389_s4  }
 0x179 PF: > { %p1161_p10 = scmp.ge.s32.totalorder %s1380_s17, 2  ;;  %s787_s5 = sand.u32 1, %s1360_s12  }
 0x17a   : > { %s788_s6 = scalar_lea.sflag [#allocation5], %s787_s5 }
 0x17b   : > { %p1154_p11 = pnand %p1161_p10, %p1457_p8 }
 0x17d   : > { %p1155_p12 = pneg %p1154_p11 }
 0x17f   : > { %1355 = dma.done.wait (%p1155_p12), %s788_s6, 256  }
 0x180   : > { %1357 = vsyncadd (%p1155_p12), %s788_s6, 4294967040  ;;  %s18_s17 = sadd.s32 1, %s1380_s17   ;;  %s1585_s12 = smov %s1364_s13 }
 0x181   : > { %p15_p13 = scmp.ge.s32.totalorder %s18_s17, 4   ;;  %s1586_s13 = smov %s1368_s14 }
 0x182   : > { %s1587_s14 = smov %s1463_s25  ;;  %s1588_s15 = smov %s1376_s16 }
 0x183   : > { %s1589_s16 = smov %s1591_s20  ;;  %17 = sbr.rel (!%p15_p13) target bundleno = 6 (0x6), region = 90 }
 0x188   :  { %794 = vsyncpa [#allocation4], 1 }
 0x189   :  { %796 = vsyncpa [#allocation4 + $0x1], 1 }
 0x18a   :  { %797 = vsyncpa [#allocation7], 1 }
 0x18b   :  { %798 = vsyncpa [#allocation5], 1 }
 0x18c   :  { %800 = vsyncpa [#allocation5 + $0x1], 1 }

</bundles_post_ra>
